<compile_context>
chip_gen: v7x
topology: tpu7x:2x2x1
jax: 0.10.0
libtpu: 0.0.40
codegen_flags: <defaults>
</compile_context>

<pallas_src>
import functools

import jax
import jax.numpy as jnp
import numpy as np
from jax import lax
from jax.experimental import pallas as pl
from jax.experimental.pallas import tpu as pltpu

GAMMA = 2.0
ALPHA = 0.25


def _focal_pow(one_minus_pt, gamma):
    """(1 - pt) ** gamma, specialized to repeated multiplies for small integer gamma."""
    g = float(gamma)
    if g == int(g) and 0 <= int(g) <= 4:
        n = int(g)
        if n == 0:
            return jnp.ones_like(one_minus_pt)
        r = one_minus_pt
        for _ in range(n - 1):
            r = r * one_minus_pt
        return r
    return one_minus_pt ** g  # general (non-integer) fallback


def _focal_loss_kernel(x_ref, t_ref, out_ref, *, gamma, alpha, rows, n_blocks,
                       n_valid_rows, need_mask):
    s = pl.program_id(0)      # parallel split (megacore-friendly)
    i = pl.program_id(1)      # sequential block within the split (reduction axis)

    @pl.when(i == 0)
    def _():
        out_ref[...] = jnp.zeros_like(out_ref)

    x = x_ref[...].astype(jnp.float32)
    t = t_ref[...].astype(jnp.float32)

    # Numerically-stable BCE with logits (matches torch.binary_cross_entropy_with_logits):
    #   bce = max(x, 0) - x*t + log(1 + exp(-|x|))
    bce = jnp.maximum(x, 0.0) - x * t + jnp.log1p(jnp.exp(-jnp.abs(x)))
    pt = jnp.exp(-bce)
    f_loss = alpha * _focal_pow(1.0 - pt, gamma) * bce

    if need_mask:
        # Zero out contributions from padded rows (only compiled in when padding exists).
        row_start = (s * n_blocks + i) * rows
        row_ids = row_start + lax.broadcasted_iota(jnp.int32, f_loss.shape, 0)
        f_loss = jnp.where(row_ids < n_valid_rows, f_loss, 0.0)

    # Fold the (rows, D) block into the resident (8, D) accumulator with pure VPU adds.
    # The one cross-lane reduce happens on the tiny (num_splits, 8, D) output in XLA.
    d = f_loss.shape[-1]
    out_ref[...] += jnp.sum(f_loss.reshape(rows // 8, 8, d), axis=0)


def focal_loss(inputs, targets, gamma=GAMMA, alpha=ALPHA, *,
               num_splits=2, block_bytes_target=2 * 1024 * 1024):
    """Mean-reduced focal loss over (N, D) logits/targets (f32 or bf16)."""
    assert inputs.shape == targets.shape and inputs.ndim == 2
    N, D = inputs.shape
    total = float(N * D)

    if N < num_splits * 8:
        num_splits = 1

    itemsize = jnp.dtype(inputs.dtype).itemsize
    # Rows per block: ~block_bytes_target per input block, multiple of 8, >= 8.
    # 2 inputs x 2 pipeline buffers x 2 MiB = 8 MiB -> safe under v5e's 16 MiB scoped
    # VMEM default and well under v6e/v7x defaults.
    rows = max(8, (block_bytes_target // (D * itemsize)) // 8 * 8)
    rows_per_split = -(-N // num_splits)                  # ceil
    rows = min(rows, ((rows_per_split + 7) // 8) * 8)     # don't exceed the work per split
    n_blocks = -(-rows_per_split // rows)                 # ceil
    n_pad = num_splits * n_blocks * rows

    x, t = inputs, targets
    if n_pad != N:
        pad = n_pad - N
        x = jnp.pad(x, ((0, pad), (0, 0)))
        t = jnp.pad(t, ((0, pad), (0, 0)))

    kernel = functools.partial(
        _focal_loss_kernel,
        gamma=float(gamma), alpha=float(alpha),
        rows=rows, n_blocks=n_blocks, n_valid_rows=N, need_mask=(n_pad != N),
    )

    partials = pl.pallas_call(
        kernel,
        out_shape=jax.ShapeDtypeStruct((num_splits, 8, D), jnp.float32),
        grid_spec=pltpu.PrefetchScalarGridSpec(
            num_scalar_prefetch=0,
            grid=(num_splits, n_blocks),
            in_specs=[
                pl.BlockSpec((rows, D), lambda s, i: (s * n_blocks + i, 0)),
                pl.BlockSpec((rows, D), lambda s, i: (s * n_blocks + i, 0)),
            ],
            # Output block is resident across the (arbitrary) reduction axis; the
            # leading split dim is squeezed so the kernel accumulates into (8, D).
            out_specs=pl.BlockSpec((None, 8, D), lambda s, i: (s, 0, 0)),
        ),
        compiler_params=pltpu.CompilerParams(
            dimension_semantics=("parallel", "arbitrary"),
        ),
    )(x, t)

    # Tiny final cross-lane reduce + mean in plain XLA.
    return jnp.sum(partials) / total


def focal_loss_ref(inputs, targets, gamma=GAMMA, alpha=ALPHA):
    x = inputs.astype(jnp.float32)
    t = targets.astype(jnp.float32)
    bce = jnp.maximum(x, 0.0) - x * t + jnp.log1p(jnp.exp(-jnp.abs(x)))
    pt = jnp.exp(-bce)
    return jnp.mean(alpha * (1.0 - pt) ** gamma * bce)


if __name__ == "__main__":
    key = jax.random.PRNGKey(0)

    # Primary demo: small multi-label head, batch=16, labels=128.
    k1, k2, k3, k4 = jax.random.split(key, 4)
    N, D = 16, 128
    logits = jax.random.normal(k1, (N, D), dtype=jnp.float32) * 2.0
    targets = (jax.random.uniform(k2, (N, D)) > 0.5).astype(jnp.float32)

    loss = focal_loss(logits, targets)
    jax.block_until_ready(loss)
    ref = focal_loss_ref(logits, targets)
    np.testing.assert_allclose(np.asarray(loss), np.asarray(ref), rtol=1e-5, atol=1e-6)

    # Second check: N not divisible by the tile (exercises padding + in-kernel mask)
    # and a wider label dim.
    N2, D2 = 300, 256
    logits2 = jax.random.normal(k3, (N2, D2), dtype=jnp.float32) * 2.0
    targets2 = (jax.random.uniform(k4, (N2, D2)) > 0.5).astype(jnp.float32)

    loss2 = focal_loss(logits2, targets2)
    jax.block_until_ready(loss2)
    ref2 = focal_loss_ref(logits2, targets2)
    np.testing.assert_allclose(np.asarray(loss2), np.asarray(ref2), rtol=1e-5, atol=1e-6)

    print("KERNEL_OK")
</pallas_src>

<mosaic_0001>
module attributes {stable_mosaic.version = 11 : i64} {
  func.func @_focal_loss_kernel(%arg0: i32, %arg1: i32, %arg2: memref<8x128xf32, #tpu.memory_space<vmem>>, %arg3: memref<8x128xf32, #tpu.memory_space<vmem>>, %arg4: memref<1x8x128xf32, #tpu.memory_space<vmem>>) attributes {dimension_semantics = [#tpu.dimension_semantics<parallel>, #tpu.dimension_semantics<arbitrary>], iteration_bounds = array<i64: 2, 1>, scalar_prefetch = 0 : i64, scratch_operands = 0 : i64, tpu.core_type = #tpu.core_type<tc>, window_params = [{transform_indices = @transform_0, window_bounds = array<i64: 8, 128>}, {transform_indices = @transform_1, window_bounds = array<i64: 8, 128>}, {transform_indices = @transform_2, window_bounds = array<i64: 1, 8, 128>}]} {
    %c0_i32 = arith.constant 0 : i32
    %0 = arith.cmpi eq, %arg1, %c0_i32 : i32
    %1 = arith.extui %0 : i1 to i32
    %c0_i32_0 = arith.constant 0 : i32
    %2 = arith.cmpi ne, %1, %c0_i32_0 : i32
    scf.if %2 {
      %cst_15 = arith.constant 0.000000e+00 : f32
      %32 = vector.broadcast %cst_15 : f32 to vector<8x128xf32>
      %c0_16 = arith.constant 0 : index
      %c0_17 = arith.constant 0 : index
      %c0_18 = arith.constant 0 : index
      %33 = vector.load %arg4[%c0_16, %c0_17, %c0_18] : memref<1x8x128xf32, #tpu.memory_space<vmem>>, vector<1x8x128xf32>
      %34 = vector.shape_cast %33 : vector<1x8x128xf32> to vector<8x128xf32>
      %35 = vector.shape_cast %32 : vector<8x128xf32> to vector<1x8x128xf32>
      tpu.vector_store %arg4[%c0_16, %c0_17, %c0_18], %35 {strides = array<i32>} : memref<1x8x128xf32, #tpu.memory_space<vmem>>, vector<1x8x128xf32>,
    } else {
    }
    %c0 = arith.constant 0 : index
    %c0_1 = arith.constant 0 : index
    %3 = vector.load %arg2[%c0, %c0_1] : memref<8x128xf32, #tpu.memory_space<vmem>>, vector<8x128xf32>
    %c0_2 = arith.constant 0 : index
    %c0_3 = arith.constant 0 : index
    %4 = vector.load %arg3[%c0_2, %c0_3] : memref<8x128xf32, #tpu.memory_space<vmem>>, vector<8x128xf32>
    %cst = arith.constant 0.000000e+00 : f32
    %5 = vector.broadcast %cst : f32 to vector<8x128xf32>
    %6 = arith.maximumf %3, %5 : vector<8x128xf32>
    %7 = arith.mulf %3, %4 : vector<8x128xf32>
    %8 = arith.subf %6, %7 : vector<8x128xf32>
    %9 = math.absf %3 : vector<8x128xf32>
    %cst_4 = arith.constant 0.000000e+00 : f32
    %10 = vector.broadcast %cst_4 : f32 to vector<8x128xf32>
    %11 = arith.subf %10, %9 : vector<8x128xf32>
    %12 = math.exp %11 : vector<8x128xf32>
    %13 = math.log1p %12 : vector<8x128xf32>
    %14 = arith.addf %8, %13 : vector<8x128xf32>
    %cst_5 = arith.constant 0.000000e+00 : f32
    %15 = vector.broadcast %cst_5 : f32 to vector<8x128xf32>
    %16 = arith.subf %15, %14 : vector<8x128xf32>
    %17 = math.exp %16 : vector<8x128xf32>
    %cst_6 = arith.constant 1.000000e+00 : f32
    %18 = vector.broadcast %cst_6 : f32 to vector<8x128xf32>
    %19 = arith.subf %18, %17 : vector<8x128xf32>
    %20 = arith.mulf %19, %19 : vector<8x128xf32>
    %cst_7 = arith.constant 2.500000e-01 : f32
    %21 = vector.broadcast %cst_7 : f32 to vector<8x128xf32>
    %22 = arith.mulf %21, %20 : vector<8x128xf32>
    %23 = arith.mulf %22, %14 : vector<8x128xf32>
    %c0_8 = arith.constant 0 : index
    %c0_9 = arith.constant 0 : index
    %c0_10 = arith.constant 0 : index
    %24 = vector.load %arg4[%c0_8, %c0_9, %c0_10] : memref<1x8x128xf32, #tpu.memory_space<vmem>>, vector<1x8x128xf32>
    %25 = vector.shape_cast %24 : vector<1x8x128xf32> to vector<8x128xf32>
    %26 = vector.shape_cast %23 : vector<8x128xf32> to vector<1x8x128xf32>
    %cst_11 = arith.constant dense<0.000000e+00> : vector<8x128xf32>
    %27 = vector.multi_reduction <add>, %26, %cst_11 [0] : vector<1x8x128xf32> to vector<8x128xf32>
    %28 = arith.addf %25, %27 : vector<8x128xf32>
    %c0_12 = arith.constant 0 : index
    %c0_13 = arith.constant 0 : index
    %c0_14 = arith.constant 0 : index
    %29 = vector.load %arg4[%c0_12, %c0_13, %c0_14] : memref<1x8x128xf32, #tpu.memory_space<vmem>>, vector<1x8x128xf32>
    %30 = vector.shape_cast %29 : vector<1x8x128xf32> to vector<8x128xf32>
    %31 = vector.shape_cast %28 : vector<8x128xf32> to vector<1x8x128xf32>
    tpu.vector_store %arg4[%c0_12, %c0_13, %c0_14], %31 {strides = array<i32>} : memref<1x8x128xf32, #tpu.memory_space<vmem>>, vector<1x8x128xf32>,
    return
  }
  func.func @transform_0(%arg0: i32, %arg1: i32) -> (i32, i32) {
    %c1_i32 = arith.constant 1 : i32
    %0 = arith.muli %arg0, %c1_i32 : i32
    %1 = arith.addi %0, %arg1 : i32
    %c0_i32 = arith.constant 0 : i32
    %c0_i32_0 = arith.constant 0 : i32
    return %1, %c0_i32 : i32, i32
  }
  func.func @transform_1(%arg0: i32, %arg1: i32) -> (i32, i32) {
    %c1_i32 = arith.constant 1 : i32
    %0 = arith.muli %arg0, %c1_i32 : i32
    %1 = arith.addi %0, %arg1 : i32
    %c0_i32 = arith.constant 0 : i32
    %c0_i32_0 = arith.constant 0 : i32
    return %1, %c0_i32 : i32, i32
  }
  func.func @transform_2(%arg0: i32, %arg1: i32) -> (i32, i32, i32) {
    %c0_i32 = arith.constant 0 : i32
    %c0_i32_0 = arith.constant 0 : i32
    %c0_i32_1 = arith.constant 0 : i32
    return %arg0, %c0_i32, %c0_i32_0 : i32, i32, i32
  }
}

</mosaic_0001>

<bundles_post_ra>
// kernel: tpu_custom_call.1
= control target key start
LH: loop header
LB: loop body
LE: loop exit
PB: predicated region body
PF: predicated region fallthrough
CT: control target
= control target key end

     0   :  { %7 = vsyncpa [#allocation3], 0  ;;  %s849_s0 = inlined_call_operand.hbm [shape: f32[16,128], index: 0, kind: input, shape index: {}]   ;;  %s850_s1 = inlined_call_operand.hbm [shape: f32[16,128], index: 1, kind: input, shape index: {}]   ;;  %s851_s2 = inlined_call_operand.hbm [shape: f32[2,8,128], index: 2, kind: output, shape index: {}]  }
   0x1   :  { %9 = vsyncpa [#allocation3 + $0x1], 0 }
   0x2   :  { %10 = vsyncpa [#allocation6], 0 }
   0x3   :  { %12 = vsyncpa [#allocation6 + $0x1], 0 }
   0x4   :  { %13 = vsyncpa [#allocation4], 0 }
   0x5   :  { %15 = vsyncpa [#allocation4 + $0x1], 0  ;;  %s624_s9 = smov 0   ;;  %s626_s10 = smov 0  }
   0x6   :  { %s628_s11 = smov 0   ;;  %s630_s12 = smov 0  }
   0x7   :  { %s632_s13 = smov 0   ;;  %s634_s14 = smov 0  }
   0x8 LB: > { %s368_s15 = sadd.s32 4294967295, %s604_s14   ;;  %s369_s16 = sadd.s32 4294967294, %s604_s14   ;;  %s604_s14 = sphi %s634_s14, %s21_s14   ;;  %s600_s13 = sphi %s632_s13, %s871_s13   ;;  %s596_s12 = sphi %s630_s12, %s870_s12   ;;  %s592_s11 = sphi %s628_s11, %s869_s11   ;;  %s588_s10 = sphi %s626_s10, %s868_s10   ;;  %s584_s9 = sphi %s624_s9, %s867_s9  }
   0x9   : > { %s33_s17 = sadd.s32 1, %s600_s13  ;;  %s42_s18 = sadd.s32 1, %s592_s11 }
   0xa   : > { %p35_p0 = scmp.ge.s32.totalorder %s33_s17, 2  ;;  %p49_p1 = scmp.ne.s32.totalorder %s592_s11, %s588_s10 }
   0xb   : > { %p50_p2 = scmp.eq.s32.totalorder %s604_s14, 0  ;;  %p55_p3 = scmp.ne.s32.totalorder %s588_s10, %s584_s9 }
   0xc   : > { %s873_s17 = smov (%p35_p0, %s33_s17), 0  ;;  %p56_p5 = scmp.eq.s32.totalorder %s368_s15, 0 }
   0xd   : > { %p665_p4 = por %p50_p2, %p49_p1  ;;  %s39_s20 = ssub.s32 %s600_s13, %s873_s17 }
   0xe   : > { %p107_p6 = scmp.eq.s32.totalorder %s368_s15, 1  ;;  %p40_p7 = scmp.eq.s32.totalorder %s39_s20, 0 }
   0xf   : > { %p671_p8 = por %p56_p5, %p55_p3  ;;  %p113_p10 = scmp.eq.s32.totalorder %s369_s16, 1 }
  0x10   : > { %p675_p9 = por %p107_p6, %p49_p1  ;;  %p401_p13 = scmp.lt.s32.totalorder %s604_s14, 2 }
  0x11   : > { %s855_s21 = scalar_select %p671_p8, 1, 0 }
  0x12   : > { %s856_s22 = scalar_select %p675_p9, 1, 0 }
  0x13   : > { %s680_s23 = scalar_select %p40_p7, %s592_s11, %s42_s18  }
  0x14   : > { %p682_p11 = por %p113_p10, %p55_p3  ;;  %s689_s25 = sand.u32 1, %s592_s11  }
  0x15   : > { %s372_s26 = sshll.u32 %s689_s25, 3  ;;  %s373_s27 = sshll.u32 %s600_s13, 7 }
  0x16   : > { %s857_s24 = scalar_select %p682_p11, 1, 0 }
  0x17   : > { %s698_s30 = scalar_lea.hbm %s849_s0, %s373_s27  ;;  %s137_s3 = scalar_lea.vmem [#allocation2], %s372_s26 }
  0x18   : > { %s145_s4 = sshll.u32 %s137_s3, 4  ;;  %p706_p0 = pnand %p401_p13, %p665_p4  ;;  %s702_s4 = int_to_ptr.vmem [resolvable:$true] %s145_s4 }
  0x19   : > { %s134_s6 = scalar_lea.sflag [#allocation3], %s689_s25  ;;  %s458_s7 = scalar_lea.hbm %s698_s30, 128 }
  0x1a   : > { %p459_p3 = scmp.ne.s32.totalorder %s698_s30, %s458_s7  ;;  %p460_p5 = pneg %p706_p0 }
  0x1b   : > { %s463_s16 = scalar_lea.hbm %s849_s0, 256  ;;  %p464_p4 = scmp.lt.u32.totalorder %s698_s30, %s849_s0 }
  0x1c   : > { %p461_p6 = pnand %p460_p5, %p459_p3  ;;  %p465_p10 = scmp.lt.u32.totalorder %s463_s16, %s458_s7 }
  0x1d   : > { %p467_p12 = scmp.lt.u32.totalorder %s458_s7, %s698_s30 }
  0x1e   : > { %p462_p7 = pneg %p461_p6  ;;  %p466_p13 = por %p465_p10, %p464_p4 }
  0x20   : > { %p468_p1 = por %p467_p12, %p466_p13 }
  0x22   : > { %p469_p2 = pnand %p468_p1, %p462_p7 }
  0x24   : > { %472 = shalt.err (!%p469_p2)
}
  0x25   : > { %s473_s20 = scalar_lea.vmem %s702_s4, 128  ;;  %s606_s28 = smov [#allocation2]  }
  0x26   : > { %p474_p3 = scmp.ne.s32.totalorder %s702_s4, %s473_s20  ;;  %s478_s29 = sshll.u32 %s606_s28, 4  ;;  %s479_s29 = int_to_ptr.vmem [resolvable:$false] %s478_s29 }
  0x27   : > { %s480_s3 = scalar_lea.vmem %s479_s29, 256  ;;  %p481_p9 = scmp.lt.s32.totalorder %s702_s4, %s479_s29 }
  0x28   : > { %p476_p6 = pnand %p474_p3, %p460_p5  ;;  %p482_p4 = scmp.lt.s32.totalorder %s480_s3, %s473_s20 }
  0x2a   : > { %p477_p11 = pneg %p476_p6  ;;  %p483_p10 = por %p482_p4, %p481_p9 }
  0x2c   : > { %p484_p12 = pnand %p483_p10, %p477_p11 }
  0x2e   : > { %487 = shalt.err (!%p484_p12)
}
  0x2f   : > { %393 = dma.hbm_to_vmem [thread:$0]  (!%p706_p0), %s698_s30, 128, %s702_s4, %s134_s6  }
  0x30   : > { %p859_p1 = scmp.lt.s32.totalorder %s604_s14, 3  ;;  %p860_p2 = scmp.ge.s32.totalorder %s604_s14, 1 }
  0x31   : > { %s751_s16 = scalar_lea.hbm %s850_s1, %s373_s27  ;;  %s156_s18 = scalar_lea.vmem [#allocation5], %s372_s26 }
  0x32   : > { %p742_p7 = pnand %p860_p2, %p859_p1  ;;  %s164_s19 = sshll.u32 %s156_s18, 4  ;;  %s165_s19 = int_to_ptr.vmem [resolvable:$true] %s164_s19 }
  0x33   : > { %s153_s30 = scalar_lea.sflag [#allocation6], %s689_s25  ;;  %s488_s4 = scalar_lea.hbm %s751_s16, 128 }
  0x34   : > { %s861_s7 = scalar_select %p742_p7, 1, 0 }
  0x35   : > { %p489_p9 = scmp.ne.s32.totalorder %s751_s16, %s488_s4  ;;  %s493_s27 = scalar_lea.hbm %s850_s1, 256 }
  0x36   : > { %p494_p3 = scmp.lt.u32.totalorder %s751_s16, %s850_s1  ;;  %p495_p6 = scmp.lt.u32.totalorder %s493_s27, %s488_s4 }
  0x37   : > { %p491_p11 = pnand %p489_p9, %p460_p5  ;;  %p497_p10 = scmp.lt.u32.totalorder %s488_s4, %s751_s16 }
  0x38   : > { %p496_p4 = por %p495_p6, %p494_p3 }
  0x39   : > { %p492_p13 = pneg %p491_p11 }
  0x3a   : > { %p498_p12 = por %p497_p10, %p496_p4 }
  0x3c   : > { %p499_p1 = pnand %p498_p12, %p492_p13 }
  0x3e   : > { %502 = shalt.err (!%p499_p1)
}
  0x3f   : > { %s503_s25 = scalar_lea.vmem %s165_s19, 128  ;;  %s607_s26 = smov [#allocation5]  }
  0x40   : > { %p504_p2 = scmp.ne.s32.totalorder %s165_s19, %s503_s25  ;;  %s508_s3 = sshll.u32 %s607_s26, 4  ;;  %s509_s3 = int_to_ptr.vmem [resolvable:$false] %s508_s3 }
  0x41   : > { %s510_s8 = scalar_lea.vmem %s509_s3, 256  ;;  %p511_p8 = scmp.lt.s32.totalorder %s165_s19, %s509_s3 }
  0x42   : > { %p506_p9 = pnand %p504_p2, %p460_p5  ;;  %p512_p7 = scmp.lt.s32.totalorder %s510_s8, %s503_s25 }
  0x44   : > { %p507_p11 = pneg %p506_p9  ;;  %p513_p3 = por %p512_p7, %p511_p8 }
  0x46   : > { %p514_p6 = pnand %p513_p3, %p507_p11 }
  0x48   : > { %517 = shalt.err (!%p514_p6)
}
  0x49   : > { %396 = dma.hbm_to_vmem [thread:$0]  (!%p706_p0), %s751_s16, 128, %s165_s19, %s153_s30  }
  0x4a   : > { %p862_p13 = scmp.ne.s32.totalorder %s861_s7, 0 }
  0x4b   : > { %s778_s15 = sand.u32 (!%p862_p13), 1, %s588_s10   ;;  %p863_p8 = scmp.ne.s32.totalorder (!%p862_p13), %s855_s21, 0 }
  0x4c   : > { %173 = sbr.rel (%p862_p13) target bundleno = 159 (0x9f), region = 28  ;;  %s781_s18 = sshll.u32 (!%p862_p13), %s778_s15, 3 }
  0x4d   : > { %s176_s4 = scalar_lea.sflag (!%p862_p13), [#allocation3], %s778_s15  ;;  %s179_s6 = scalar_lea.vmem (!%p862_p13), [#allocation2], %s781_s18 }
  0x53   : > { %571 = dma.done.wait (%p863_p8), %s176_s4, 128  }
  0x54   : > { %573 = vsyncadd (%p863_p8), %s176_s4, 4294967168  ;;  %s185_s5 = scalar_lea.sflag [#allocation6], %s778_s15  ;;  %s188_s7 = scalar_lea.vmem [#allocation5], %s781_s18 }
  0x55   : > { %575 = dma.done.wait (%p863_p8), %s185_s5, 128  }
  0x56   : > { %577 = vsyncadd (%p863_p8), %s185_s5, 4294967168  ;;  %v221_v0 = vld [vmem:[%s179_s6] sm:$0xff]  ;;  %v222_v7 = vld [vmem:[%s188_s7] sm:$0xff]  ;;  %s381_s21 = sshll.u32 %s596_s12, 7  ;;  %s213_s16 = scalar_lea.vmem [#allocation7], %s781_s18 }
  0x57   : > { %v226_v1 = vand.u32 2147483647, %v221_v0  ;;  %v223_v9 = vmax.f32 %v221_v0, 0.0  ;;  %v224_v10 = vmul.f32 %v222_v7, %v221_v0  ;;  %s265_s19 = sshll.u32 %s213_s16, 4  ;;  %s800_s27 = scalar_lea.hbm %s851_s2, %s381_s21  ;;  %s802_s19 = int_to_ptr.vmem [resolvable:$true] %s265_s19 }
  0x58   : > { %s252_s28 = scalar_lea.sflag [#allocation4], %s778_s15  ;;  %s518_s29 = scalar_lea.vmem %s802_s19, 128 }
  0x59   : > { %v227_v2 = vsub.f32 0.0, %v226_v1  ;;  %v225_v14 = vsub.f32 %v223_v9, %v224_v10  ;;  %p519_p0 = scmp.ne.s32.totalorder %s802_s19, %s518_s29  ;;  %p864_p5 = scmp.ne.s32.totalorder %s856_s22, 0 }
  0x5a   : > { %s608_s12 = smov [#allocation7]  }
  0x5b   : > { %v228_v3 = vmul.f32 1.442695, %v227_v2  ;;  %p520_p7 = pnand %p519_p0, %p864_p5  ;;  %s522_s25 = sshll.u32 %s608_s12, 4  ;;  %s523_s25 = int_to_ptr.vmem [resolvable:$false] %s522_s25 }
  0x5c   : > { %s524_s26 = scalar_lea.vmem %s523_s25, 256  ;;  %p525_p10 = scmp.lt.s32.totalorder %s802_s19, %s523_s25 }
  0x5d   : > { %452 = vpow2.f32 %v228_v3  ;;  %p521_p4 = pneg %p520_p7  ;;  %p526_p12 = scmp.lt.s32.totalorder %s524_s26, %s518_s29 }
  0x5f   : > { %p527_p1 = por %p526_p12, %p525_p10 }
  0x61   : > { %p528_p2 = pnand %p527_p1, %p521_p4 }
  0x67   : > { %v453_v4 = vpop.eup %452 }
  0x68   : > { %v230_v5 = vadd.f32 1.0, %v453_v4  ;;  %v233_v6 = vmul.f32 -0.5, %v453_v4  ;;  %v236_v11 = vand.u32 2147483647, %v453_v4 }
  0x6a   : > { %454 = vlog2.f32 %v230_v5  ;;  %v234_v8 = vadd.f32 1.0, %v233_v6  ;;  %vm237_vm0 = vcmp.lt.f32.partialorder %v236_v11, 0.0004427343 }
  0x6c   : > { %v235_v12 = vmul.f32 %v453_v4, %v234_v8 }
  0x74   : > { %v455_v13 = vpop.eup %454 }
  0x75   : > { %v232_v15 = vmul.f32 0.6931472, %v455_v13 }
  0x77   : > { %v238_v16 = vsel %vm237_vm0, %v235_v12, %v232_v15 }
  0x78   : > { %v239_v17 = vadd.f32 %v238_v16, %v225_v14 }
  0x7a   : > { %v240_v18 = vsub.f32 0.0, %v239_v17 }
  0x7c   : > { %v241_v19 = vmul.f32 1.442695, %v240_v18 }
  0x7e   : > { %456 = vpow2.f32 %v241_v19 }
  0x88   : > { %v457_v20 = vpop.eup %456 }
  0x89   : > { %v243_v21 = vsub.f32 1.0, %v457_v20 }
  0x8b   : > { %v244_v22 = vmul.f32 %v243_v21, %v243_v21 }
  0x8d   : > { %v245_v23 = vmul.f32 0.25, %v244_v22 }
  0x8f   : > { %v246_v24 = vmul.f32 %v245_v23, %v239_v17 }
  0x91   : > { %250 = vst [vmem:[%s213_s16] sm:$0xff] %v246_v24 }
  0x92   : > { %531 = shalt.err (!%p528_p2)
}
  0x93   : > { %s532_s3 = scalar_lea.hbm %s800_s27, 128  ;;  %s536_s18 = scalar_lea.hbm %s851_s2, 256 }
  0x94   : > { %p533_p9 = scmp.ne.s32.totalorder %s800_s27, %s532_s3  ;;  %p537_p6 = scmp.lt.u32.totalorder %s800_s27, %s851_s2 }
  0x95   : > { %p538_p13 = scmp.lt.u32.totalorder %s536_s18, %s532_s3  ;;  %p540_p0 = scmp.lt.u32.totalorder %s532_s3, %s800_s27 }
  0x96   : > { %p534_p11 = pnand %p533_p9, %p864_p5 }
  0x97   : > { %p539_p8 = por %p538_p13, %p537_p6 }
  0x98   : > { %p535_p3 = pneg %p534_p11 }
  0x99   : > { %p541_p7 = por %p540_p0, %p539_p8 }
  0x9b   : > { %p542_p4 = pnand %p541_p7, %p535_p3 }
  0x9d   : > { %545 = shalt.err (!%p542_p4)
}
  0x9e   : > { %388 = dma.vmem_to_hbm [thread:$0]  (%p864_p5), %s802_s19, 128, %s800_s27, %s252_s28  }
  0x9f PF: > { %s277_s5 = sand.u32 1, %s584_s9   ;;  %p865_p10 = scmp.ne.s32.totalorder %s857_s24, 0 }
  0xa0   : > { %p866_p12 = scmp.ge.s32.totalorder %s604_s14, 2  ;;  %s278_s7 = scalar_lea.sflag [#allocation4], %s277_s5 }
  0xa2   : > { %p398_p1 = pnand %p866_p12, %p865_p10 }
  0xa4   : > { %579 = dma.done.wait (!%p398_p1), %s278_s7, 128  }
  0xa5   : > { %581 = vsyncadd (!%p398_p1), %s278_s7, 4294967168  ;;  %s21_s14 = sadd.s32 1, %s604_s14   ;;  %s867_s9 = smov %s588_s10 }
  0xa6   : > { %p18_p2 = scmp.ge.s32.totalorder %s21_s14, 4   ;;  %s868_s10 = smov %s592_s11 }
  0xa7   : > { %s869_s11 = smov %s680_s23  ;;  %s870_s12 = smov %s600_s13 }
  0xa8   : > { %s871_s13 = smov %s873_s17  ;;  %20 = sbr.rel (!%p18_p2) target bundleno = 8 (0x8), region = 90 }
  0xaf   :  { %283 = vsyncpa [#allocation3], 1 }
  0xb0   :  { %285 = vsyncpa [#allocation3 + $0x1], 1 }
  0xb1   :  { %286 = vsyncpa [#allocation6], 1 }
  0xb2   :  { %288 = vsyncpa [#allocation6 + $0x1], 1 }
  0xb3   :  { %289 = vsyncpa [#allocation4], 1 }
  0xb4   :  { %291 = vsyncpa [#allocation4 + $0x1], 1 }

</bundles_post_ra>
